<compile_context>
chip_gen: v7x
topology: tpu7x:2x2x1
jax: 0.10.0
libtpu: 0.0.40
codegen_flags: <defaults>
</compile_context>

<pallas_src>
import jax
import jax.numpy as jnp
from jax.experimental import pallas as pl
from jax.experimental.pallas import tpu as pltpu

# ----------------------------- model dims -----------------------------------
BATCH       = 16          # demo batch (1 grid step)
INPUT_SIZE  = 16
OUTPUT_SIZE = 16
BOTTLENECK  = 8
BIG_NUMBER  = 32          # net_width of both encoder and decoder
DROPOUT_P   = 0.15        # identity at inference
BN_EPS      = 1e-5

_PREC = jax.lax.Precision.HIGHEST   # pinned in kernel AND reference

# --------------------------- param-slab layout -------------------------------
# One f32 slab of shape (SLAB_ROWS, 128).  Every weight starts at a row offset
# that is a multiple of 8 (sublane-aligned) and occupies lanes [0:cols).
EW0_R = 0      # Linear(16 -> 32) weight, stored (in, out)              : 16 rows
EW1_R = 16     # Linear(32 -> 32) weight, BN0 folded in                 : 32 rows
EW2_R = 48     # Linear(32 ->  8) weight, BN1 folded, padded to 32 cols : 32 rows
DW0_R = 80     # Linear( 8 -> 32) weight, padded to 32 rows (8..31 = 0) : 32 rows
DW1_R = 112    # Linear(32 -> 32) weight, BN folded in                  : 32 rows
DW2_R = 144    # Linear(32 -> 16) weight, BN folded in                  : 32 rows
BIAS_R = 176   # 6 bias rows (eb0, eb1f, eb2f(pad32), db0, db1f, db2f)  :  8 rows
SLAB_ROWS = 184
SLAB_LANES = 128


# ------------------------------ kernel ---------------------------------------
def _autoencoder_kernel(x_ref, slab_ref, o_ref):
    x = x_ref[...].astype(jnp.float32)

    def w(r0, rows, cols):
        return slab_ref[r0:r0 + rows, 0:cols]

    def b(idx, cols):
        r = BIAS_R + idx
        return slab_ref[r:r + 1, 0:cols]

    def matmul(h, weight, bias):
        return jnp.dot(h, weight,
                       preferred_element_type=jnp.float32,
                       precision=_PREC) + bias

    # ---- encoder (Dropout = identity, BN folded into the following Linear) ----
    h = jnp.maximum(matmul(x, w(EW0_R, 16, 32), b(0, 32)), 0.0)
    h = jnp.maximum(matmul(h, w(EW1_R, 32, 32), b(1, 32)), 0.0)
    # bottleneck padded 8 -> 32 lanes (extra cols and bias lanes are zero)
    h = matmul(h, w(EW2_R, 32, 32), b(2, 32))

    # ---- torch.sigmoid_ (padded lanes become 0.5; killed by zero DW0 rows) ----
    h = jax.nn.sigmoid(h)

    # ---- decoder ----
    h = jnp.maximum(matmul(h, w(DW0_R, 32, 32), b(3, 32)), 0.0)
    h = jnp.maximum(matmul(h, w(DW1_R, 32, 32), b(4, 32)), 0.0)
    out = matmul(h, w(DW2_R, 32, OUTPUT_SIZE), b(5, OUTPUT_SIZE))

    o_ref[...] = out.astype(o_ref.dtype)


# ------------------------------ wrapper ---------------------------------------
def _choose_tb(batch):
    """Batch-tile policy.

    Per grid step costs ~0.35 us of pipeline overhead, which exceeds the entire
    compute for small tiles of this tiny network, so we use ONE grid step for
    any batch up to 2048 rows (VMEM cost at 2048 rows is ~0.35 MiB, trivial on
    all generations).  Only beyond that do we split into 1024-row tiles so each
    step carries enough work (and v7x megacore sharding is worthwhile).
    """
    bp8 = pl.cdiv(batch, 8) * 8
    if bp8 <= 2048:
        return bp8            # single grid step
    return 1024               # large batch: >=2 steps, >=1024 rows each


def autoencoder_forward(x, slab):
    """x: (B, INPUT_SIZE) float32.  slab: (SLAB_ROWS, SLAB_LANES) float32."""
    B = x.shape[0]
    TB = _choose_tb(B)
    Bp = pl.cdiv(B, TB) * TB
    if Bp != B:
        x = jnp.pad(x, ((0, Bp - B), (0, 0)))

    grid = (Bp // TB,)
    out = pl.pallas_call(
        _autoencoder_kernel,
        out_shape=jax.ShapeDtypeStruct((Bp, OUTPUT_SIZE), jnp.float32),
        grid_spec=pl.GridSpec(
            grid=grid,
            in_specs=[
                pl.BlockSpec((TB, INPUT_SIZE), lambda i: (i, 0)),
                # single packed parameter slab, constant block index -> 1 DMA
                pl.BlockSpec((SLAB_ROWS, SLAB_LANES), lambda i: (0, 0)),
            ],
            # 16 == full last dim of the output, so this narrow block is legal;
            # writes only the real 16 columns (8x less HBM writeback vs 128).
            out_specs=pl.BlockSpec((TB, OUTPUT_SIZE), lambda i: (i, 0)),
        ),
        compiler_params=pltpu.CompilerParams(
            dimension_semantics=("parallel",)),
    )(x, slab)
    return out[:B] if Bp != B else out


# -------------------------- parameter construction ----------------------------
def make_raw_params(key):
    """Raw (unfolded) parameters matching the PyTorch module shapes."""
    keys = iter(jax.random.split(key, 32))

    def linear(in_f, out_f):
        # weight stored as (in_f, out_f) == W^T of PyTorch's (out_f, in_f)
        w = jax.random.normal(next(keys), (in_f, out_f), jnp.float32) / jnp.sqrt(in_f)
        b = 0.01 * jax.random.normal(next(keys), (out_f,), jnp.float32)
        return w, b

    def bn(n):
        gamma = 1.0 + 0.1 * jax.random.normal(next(keys), (n,), jnp.float32)
        beta = 0.1 * jax.random.normal(next(keys), (n,), jnp.float32)
        mean = 0.1 * jax.random.normal(next(keys), (n,), jnp.float32)
        var = jnp.abs(jax.random.normal(next(keys), (n,), jnp.float32)) + 0.5
        scale = gamma / jnp.sqrt(var + BN_EPS)
        shift = beta - mean * scale
        return scale, shift

    def mlp(in_f, width, out_f):
        w0, b0 = linear(in_f, width); s0, t0 = bn(width)
        w1, b1 = linear(width, width); s1, t1 = bn(width)
        w2, b2 = linear(width, out_f)
        return ((w0, b0, s0, t0), (w1, b1, s1, t1), (w2, b2))

    return {"enc": mlp(INPUT_SIZE, BIG_NUMBER, BOTTLENECK),
            "dec": mlp(BOTTLENECK, BIG_NUMBER, OUTPUT_SIZE)}


def build_param_slab(raw):
    """Fold BN affines into the next layer and pack everything into one slab."""
    def fold(scale, shift, w, b):
        # (relu * scale + shift) @ W + b  ==  relu @ (scale[:,None]*W) + (shift@W + b)
        return scale[:, None] * w, shift @ w + b

    (ew0, eb0, es0, et0), (ew1, eb1, es1, et1), (ew2, eb2) = raw["enc"]
    (dw0, db0, ds0, dt0), (dw1, db1, ds1, dt1), (dw2, db2) = raw["dec"]

    ew1, eb1 = fold(es0, et0, ew1, eb1)
    ew2, eb2 = fold(es1, et1, ew2, eb2)
    dw1, db1 = fold(ds0, dt0, dw1, db1)
    dw2, db2 = fold(ds1, dt1, dw2, db2)   # final linears have no BN after them

    slab = jnp.zeros((SLAB_ROWS, SLAB_LANES), jnp.float32)

    def put(s, r0, arr):
        arr = jnp.atleast_2d(arr)
        rows, cols = arr.shape
        return s.at[r0:r0 + rows, 0:cols].set(arr)

    slab = put(slab, EW0_R, ew0)
    slab = put(slab, EW1_R, ew1)
    slab = put(slab, EW2_R, ew2)          # cols 8..31 stay zero (bottleneck pad)
    slab = put(slab, DW0_R, dw0)          # rows 8..31 stay zero (bottleneck pad)
    slab = put(slab, DW1_R, dw1)
    slab = put(slab, DW2_R, dw2)
    for i, bias in enumerate([eb0, eb1, eb2, db0, db1, db2]):
        slab = put(slab, BIAS_R + i, bias)
    return slab


# ------------------------------ JAX reference ---------------------------------
def reference_forward(x, raw):
    """Unfused eval-mode forward with explicit BN affine (validates the fold too)."""
    def dot(a, b):
        return jnp.dot(a, b, precision=_PREC)

    def mlp(h, layers):
        (w0, b0, s0, t0), (w1, b1, s1, t1), (w2, b2) = layers
        h = jnp.maximum(dot(h, w0) + b0, 0.0) * s0 + t0
        h = jnp.maximum(dot(h, w1) + b1, 0.0) * s1 + t1
        return dot(h, w2) + b2

    h = mlp(x, raw["enc"])
    h = jax.nn.sigmoid(h)
    return mlp(h, raw["dec"])


# ---------------------------------- main ---------------------------------------
if __name__ == "__main__":
    key = jax.random.PRNGKey(0)
    kx, kp = jax.random.split(key)

    x = jax.random.normal(kx, (BATCH, INPUT_SIZE), jnp.float32)
    raw = make_raw_params(kp)
    slab = build_param_slab(raw)

    out = jax.block_until_ready(autoencoder_forward(x, slab))
    ref = reference_forward(x, raw)

    assert out.shape == (BATCH, OUTPUT_SIZE)
    assert jnp.allclose(out, ref, rtol=1e-4, atol=1e-4), "mismatch vs JAX reference"

    print("KERNEL_OK")
</pallas_src>

<mosaic_0001>
module attributes {stable_mosaic.version = 11 : i64} {
  func.func @_autoencoder_kernel(%arg0: i32, %arg1: memref<16x16xf32, #tpu.memory_space<vmem>>, %arg2: memref<184x128xf32, #tpu.memory_space<vmem>>, %arg3: memref<16x16xf32, #tpu.memory_space<vmem>>) attributes {dimension_semantics = [#tpu.dimension_semantics<parallel>], iteration_bounds = array<i64: 1>, scalar_prefetch = 0 : i64, scratch_operands = 0 : i64, tpu.core_type = #tpu.core_type<tc>, window_params = [{transform_indices = @transform_0, window_bounds = array<i64: 16, 16>}, {pipeline_mode = #tpu.pipeline_mode<synchronous>, transform_indices = @transform_1, window_bounds = array<i64: 184, 128>}, {transform_indices = @transform_2, window_bounds = array<i64: 16, 16>}]} {
    %c0 = arith.constant 0 : index
    %c0_0 = arith.constant 0 : index
    %0 = vector.load %arg1[%c0, %c0_0] : memref<16x16xf32, #tpu.memory_space<vmem>>, vector<16x16xf32>
    %c0_1 = arith.constant 0 : index
    %c0_2 = arith.constant 0 : index
    %1 = vector.load %arg2[%c0_1, %c0_2] : memref<184x128xf32, #tpu.memory_space<vmem>>, vector<16x32xf32>
    %c176 = arith.constant 176 : index
    %c0_3 = arith.constant 0 : index
    %2 = vector.load %arg2[%c176, %c0_3] : memref<184x128xf32, #tpu.memory_space<vmem>>, vector<1x32xf32>
    %cst = arith.constant dense<0.000000e+00> : vector<16x32xf32>
    %3 = tpu.matmul %0, %1, %cst {dimension_numbers = #tpu.dot_dimension_numbers<[1], [0], [0], [1], [0, 0, 1, 1], [], []>, precision = #tpu.contract_precision<fp32>} : vector<16x16xf32>, vector<16x32xf32>, vector<16x32xf32> -> vector<16x32xf32>
    %4 = vector.broadcast %2 : vector<1x32xf32> to vector<16x32xf32>
    %5 = arith.addf %3, %4 : vector<16x32xf32>
    %cst_4 = arith.constant 0.000000e+00 : f32
    %6 = vector.broadcast %cst_4 : f32 to vector<16x32xf32>
    %7 = arith.maximumf %5, %6 : vector<16x32xf32>
    %c16 = arith.constant 16 : index
    %c0_5 = arith.constant 0 : index
    %8 = vector.load %arg2[%c16, %c0_5] : memref<184x128xf32, #tpu.memory_space<vmem>>, vector<32x32xf32>
    %c177 = arith.constant 177 : index
    %c0_6 = arith.constant 0 : index
    %9 = vector.load %arg2[%c177, %c0_6] : memref<184x128xf32, #tpu.memory_space<vmem>>, vector<1x32xf32>
    %cst_7 = arith.constant dense<0.000000e+00> : vector<16x32xf32>
    %10 = tpu.matmul %7, %8, %cst_7 {dimension_numbers = #tpu.dot_dimension_numbers<[1], [0], [0], [1], [0, 0, 1, 1], [], []>, precision = #tpu.contract_precision<fp32>} : vector<16x32xf32>, vector<32x32xf32>, vector<16x32xf32> -> vector<16x32xf32>
    %11 = vector.broadcast %9 : vector<1x32xf32> to vector<16x32xf32>
    %12 = arith.addf %10, %11 : vector<16x32xf32>
    %cst_8 = arith.constant 0.000000e+00 : f32
    %13 = vector.broadcast %cst_8 : f32 to vector<16x32xf32>
    %14 = arith.maximumf %12, %13 : vector<16x32xf32>
    %c48 = arith.constant 48 : index
    %c0_9 = arith.constant 0 : index
    %15 = vector.load %arg2[%c48, %c0_9] : memref<184x128xf32, #tpu.memory_space<vmem>>, vector<32x32xf32>
    %c178 = arith.constant 178 : index
    %c0_10 = arith.constant 0 : index
    %16 = vector.load %arg2[%c178, %c0_10] : memref<184x128xf32, #tpu.memory_space<vmem>>, vector<1x32xf32>
    %cst_11 = arith.constant dense<0.000000e+00> : vector<16x32xf32>
    %17 = tpu.matmul %14, %15, %cst_11 {dimension_numbers = #tpu.dot_dimension_numbers<[1], [0], [0], [1], [0, 0, 1, 1], [], []>, precision = #tpu.contract_precision<fp32>} : vector<16x32xf32>, vector<32x32xf32>, vector<16x32xf32> -> vector<16x32xf32>
    %18 = vector.broadcast %16 : vector<1x32xf32> to vector<16x32xf32>
    %19 = arith.addf %17, %18 : vector<16x32xf32>
    %20 = arith.negf %19 : vector<16x32xf32>
    %21 = math.exp %20 : vector<16x32xf32>
    %cst_12 = arith.constant 1.000000e+00 : f32
    %22 = vector.broadcast %cst_12 : f32 to vector<16x32xf32>
    %23 = arith.addf %22, %21 : vector<16x32xf32>
    %24 = arith.divf %22, %23 : vector<16x32xf32>
    %c80 = arith.constant 80 : index
    %c0_13 = arith.constant 0 : index
    %25 = vector.load %arg2[%c80, %c0_13] : memref<184x128xf32, #tpu.memory_space<vmem>>, vector<32x32xf32>
    %c179 = arith.constant 179 : index
    %c0_14 = arith.constant 0 : index
    %26 = vector.load %arg2[%c179, %c0_14] : memref<184x128xf32, #tpu.memory_space<vmem>>, vector<1x32xf32>
    %cst_15 = arith.constant dense<0.000000e+00> : vector<16x32xf32>
    %27 = tpu.matmul %24, %25, %cst_15 {dimension_numbers = #tpu.dot_dimension_numbers<[1], [0], [0], [1], [0, 0, 1, 1], [], []>, precision = #tpu.contract_precision<fp32>} : vector<16x32xf32>, vector<32x32xf32>, vector<16x32xf32> -> vector<16x32xf32>
    %28 = vector.broadcast %26 : vector<1x32xf32> to vector<16x32xf32>
    %29 = arith.addf %27, %28 : vector<16x32xf32>
    %cst_16 = arith.constant 0.000000e+00 : f32
    %30 = vector.broadcast %cst_16 : f32 to vector<16x32xf32>
    %31 = arith.maximumf %29, %30 : vector<16x32xf32>
    %c112 = arith.constant 112 : index
    %c0_17 = arith.constant 0 : index
    %32 = vector.load %arg2[%c112, %c0_17] : memref<184x128xf32, #tpu.memory_space<vmem>>, vector<32x32xf32>
    %c180 = arith.constant 180 : index
    %c0_18 = arith.constant 0 : index
    %33 = vector.load %arg2[%c180, %c0_18] : memref<184x128xf32, #tpu.memory_space<vmem>>, vector<1x32xf32>
    %cst_19 = arith.constant dense<0.000000e+00> : vector<16x32xf32>
    %34 = tpu.matmul %31, %32, %cst_19 {dimension_numbers = #tpu.dot_dimension_numbers<[1], [0], [0], [1], [0, 0, 1, 1], [], []>, precision = #tpu.contract_precision<fp32>} : vector<16x32xf32>, vector<32x32xf32>, vector<16x32xf32> -> vector<16x32xf32>
    %35 = vector.broadcast %33 : vector<1x32xf32> to vector<16x32xf32>
    %36 = arith.addf %34, %35 : vector<16x32xf32>
    %cst_20 = arith.constant 0.000000e+00 : f32
    %37 = vector.broadcast %cst_20 : f32 to vector<16x32xf32>
    %38 = arith.maximumf %36, %37 : vector<16x32xf32>
    %c144 = arith.constant 144 : index
    %c0_21 = arith.constant 0 : index
    %39 = vector.load %arg2[%c144, %c0_21] : memref<184x128xf32, #tpu.memory_space<vmem>>, vector<32x16xf32>
    %c181 = arith.constant 181 : index
    %c0_22 = arith.constant 0 : index
    %40 = vector.load %arg2[%c181, %c0_22] : memref<184x128xf32, #tpu.memory_space<vmem>>, vector<1x16xf32>
    %cst_23 = arith.constant dense<0.000000e+00> : vector<16x16xf32>
    %41 = tpu.matmul %38, %39, %cst_23 {dimension_numbers = #tpu.dot_dimension_numbers<[1], [0], [0], [1], [0, 0, 1, 1], [], []>, precision = #tpu.contract_precision<fp32>} : vector<16x32xf32>, vector<32x16xf32>, vector<16x16xf32> -> vector<16x16xf32>
    %42 = vector.broadcast %40 : vector<1x16xf32> to vector<16x16xf32>
    %43 = arith.addf %41, %42 : vector<16x16xf32>
    %c0_24 = arith.constant 0 : index
    %c0_25 = arith.constant 0 : index
    %44 = vector.load %arg3[%c0_24, %c0_25] : memref<16x16xf32, #tpu.memory_space<vmem>>, vector<16x16xf32>
    tpu.vector_store %arg3[%c0_24, %c0_25], %43 {strides = array<i32>} : memref<16x16xf32, #tpu.memory_space<vmem>>, vector<16x16xf32>,
    return
  }
  func.func @transform_0(%arg0: i32) -> (i32, i32) {
    %c0_i32 = arith.constant 0 : i32
    %c0_i32_0 = arith.constant 0 : i32
    return %arg0, %c0_i32 : i32, i32
  }
  func.func @transform_1(%arg0: i32) -> (i32, i32) {
    %c0_i32 = arith.constant 0 : i32
    %c0_i32_0 = arith.constant 0 : i32
    %c0_i32_1 = arith.constant 0 : i32
    return %c0_i32, %c0_i32_0 : i32, i32
  }
  func.func @transform_2(%arg0: i32) -> (i32, i32) {
    %c0_i32 = arith.constant 0 : i32
    %c0_i32_0 = arith.constant 0 : i32
    return %arg0, %c0_i32 : i32, i32
  }
}

</mosaic_0001>

<bundles_post_ra>
// kernel: tpu_custom_call.1
= control target key start
LH: loop header
LB: loop body
LE: loop exit
PB: predicated region body
PF: predicated region fallthrough
CT: control target
= control target key end

     0   :  { %7 = vsyncpa [#allocation3], 0  ;;  %s4462_s0 = inlined_call_operand.hbm [shape: f32[16,16], index: 0, kind: input, shape index: {}]   ;;  %s4463_s1 = inlined_call_operand.hbm [shape: f32[184,128], index: 1, kind: input, shape index: {}]   ;;  %s4464_s2 = inlined_call_operand.hbm [shape: f32[16,16], index: 2, kind: output, shape index: {}]  }
   0x1   :  { %8 = vsyncpa [#allocation6], 0 }
   0x2   :  { %9 = vsyncpa [#allocation4], 0  ;;  %s4319_s9 = smov [#allocation2]   ;;  %s4247_s13 = scalar_lea.hbm %s4462_s0, 256 }
   0x3   :  { %s15_s10 = sshll.u32 %s4319_s9, 4  ;;  %p4248_p0 = scmp.ne.s32.totalorder %s4462_s0, %s4247_s13  ;;  %s16_s10 = int_to_ptr.vmem [resolvable:$true] %s15_s10 }
   0x4   :  { %p4251_p1 = scmp.lt.u32.totalorder %s4247_s13, %s4462_s0 }
   0x6   :  { %p4253_p2 = pnand %p4251_p1, %p4248_p0 }
   0x8   :  { %4256 = shalt.err (!%p4253_p2)
}
   0x9   :  { %s4257_s18 = scalar_lea.vmem %s16_s10, 256  ;;  %p4262_p4 = scmp.lt.s32.totalorder %s16_s10, %s16_s10 }
   0xa   :  { %p4258_p3 = scmp.ne.s32.totalorder %s16_s10, %s4257_s18  ;;  %p4263_p5 = scmp.lt.s32.totalorder %s4257_s18, %s4257_s18 }
   0xc   :  { %p4264_p6 = por %p4263_p5, %p4262_p4 }
   0xe   :  { %p4265_p7 = pnand %p4264_p6, %p4258_p3 }
  0x10   :  { %4268 = shalt.err (!%p4265_p7)
}
  0x11   :  { %s4320_s19 = smov 128   ;;  %s4321_s20 = smov 8  }
  0x12   :  { %21 = dma.hbm_to_vmem [thread:$0]  %s4462_s0, 256, %s16_s10, [#allocation3], %s4320_s19, %s4320_s19, %s4321_s20  }
  0x13   :  { %s4322_s23 = smov [#allocation5]   ;;  %s4269_s27 = scalar_lea.hbm %s4463_s1, 2944 }
  0x14   :  { %s27_s24 = sshll.u32 %s4322_s23, 4  ;;  %p4270_p8 = scmp.ne.s32.totalorder %s4463_s1, %s4269_s27  ;;  %s28_s24 = int_to_ptr.vmem [resolvable:$true] %s27_s24 }
  0x15   :  { %p4273_p9 = scmp.lt.u32.totalorder %s4269_s27, %s4463_s1 }
  0x17   :  { %p4275_p10 = pnand %p4273_p9, %p4270_p8 }
  0x19   :  { %4278 = shalt.err (!%p4275_p10)
}
  0x1a   :  { %s4279_s4 = scalar_lea.vmem %s28_s24, 2944  ;;  %p4284_p12 = scmp.lt.s32.totalorder %s28_s24, %s28_s24 }
  0x1b   :  { %p4280_p11 = scmp.ne.s32.totalorder %s28_s24, %s4279_s4  ;;  %p4285_p13 = scmp.lt.s32.totalorder %s4279_s4, %s4279_s4 }
  0x1d   :  { %p4286_p0 = por %p4285_p13, %p4284_p12 }
  0x1f   :  { %p4287_p1 = pnand %p4286_p0, %p4280_p11 }
  0x21   :  { %4290 = shalt.err (!%p4287_p1)
}
  0x22   :  { %33 = dma.hbm_to_vmem [thread:$0]  %s4463_s1, 2944, %s28_s24, [#allocation6], %s4320_s19, %s4320_s19, %s4321_s20  }
  0x23   :  { %4313 = dma.done.wait [#allocation3], 256  }
  0x24   :  { %4314 = vsyncadd [#allocation3], 4294967040 }
  0x25   :  { %4315 = dma.done.wait [#allocation6], 2944  }
  0x26   :  { %4316 = vsyncadd [#allocation6], 4294964352  ;;  %vm49_vm0 = vcmask 130048   ;;  %v42_v0 = vld [vmem:[#allocation5] sm:$0xff]  ;;  %v43_v1 = vld [vmem:[#allocation5 + $0x8] sm:$0xff]  ;;  %vm569_vm1 = vcmask 261120  }
  0x27   :  { %v40_v2 = vld [vmem:[#allocation2] sm:$0xff]  ;;  %v57_v3 = vand.u32 4294901760, %v42_v0  ;;  %v60_v4 = vand.u32 4294901760, %v43_v1  ;;  %v41_v6 = vld [vmem:[#allocation2 + $0x8] sm:$0xff]  ;;  %v562_v36 = vld [vmem:[#allocation5 + $0x20] sm:$0xff]  ;;  %s4323_s1 = smov [#allocation7]  }
  0x28   :  { %v51_v5 = vsel %vm49_vm0, %v40_v2, 0  ;;  %v54_v8 = vsel %vm49_vm0, %v41_v6, 0  ;;  %v560_v30 = vld [vmem:[#allocation5 + $0x10] sm:$0xff]  ;;  %v561_v31 = vld [vmem:[#allocation5 + $0x18] sm:$0xff]  ;;  %v563_v37 = vld [vmem:[#allocation5 + $0x28] sm:$0xff]  ;;  %v583_v40 = vand.u32 4294901760, %v562_v36 }
  0x29   :  { %v123_v7 = vand.u32 4294901760, %v51_v5  ;;  %v3898_v9 = vpack.c.bf16 %v60_v4, %v57_v3  ;;  %v133_v10 = vand.u32 4294901760, %v54_v8  ;;  %v145_v11 = vsub.f32 %v42_v0, %v57_v3  ;;  %v3314_v62 = vld [vmem:[#allocation5 + $0xb0] ss:$0 sm:$0xff]  ;;  %s3301_s6 = sshll.u32 %s4323_s1, 4  ;;  %s3302_s6 = int_to_ptr.vmem [resolvable:$true] %s3301_s6 }
  0x2a   :  { %v152_v12 = vsub.f32 %v43_v1, %v60_v4  ;;  %v577_v32 = vand.u32 4294901760, %v560_v30  ;;  %v580_v33 = vand.u32 4294901760, %v561_v31  ;;  %v586_v41 = vand.u32 4294901760, %v563_v37  ;;  %s4291_s7 = scalar_lea.vmem %s3302_s6, 256  ;;  %p4296_p3 = scmp.lt.s32.totalorder %s3302_s6, %s3302_s6 }
  0x2b   :  { %v124_v13 = vsub.f32 %v51_v5, %v123_v7  ;;  %3899 = vmatprep.subr.bf16.mxu0 %v3898_v9  ;;  %v134_v14 = vsub.f32 %v54_v8, %v133_v10  ;;  %v146_v15 = vand.u32 4294901760, %v145_v11  ;;  %v681_v44 = vsub.f32 %v562_v36, %v583_v40  ;;  %p4292_p2 = scmp.ne.s32.totalorder %s3302_s6, %s4291_s7  ;;  %p4297_p4 = scmp.lt.s32.totalorder %s4291_s7, %s4291_s7 }
  0x2c   :  { %v153_v16 = vand.u32 4294901760, %v152_v12  ;;  %3901 = vmatpush3.bf16.msra.mxu0 %v3898_v9  ;;  %v3906_v28 = vpack.c.bf16 %v152_v12, %v145_v11  ;;  %v667_v34 = vsub.f32 %v560_v30, %v577_v32  ;;  %v674_v35 = vsub.f32 %v561_v31, %v580_v33 }
  0x2d   :  { %v125_v17 = vand.u32 4294901760, %v124_v13  ;;  %v135_v18 = vand.u32 4294901760, %v134_v14  ;;  %v147_v19 = vsub.f32 %v145_v11, %v146_v15  ;;  %v688_v45 = vsub.f32 %v563_v37, %v586_v41  ;;  %p4298_p5 = por %p4297_p4, %p4296_p3 }
  0x2e   :  { %v154_v20 = vsub.f32 %v152_v12, %v153_v16  ;;  %v3914_v29 = vpack.c.bf16 %v153_v16, %v146_v15  ;;  %v668_v38 = vand.u32 4294901760, %v667_v34  ;;  %v675_v39 = vand.u32 4294901760, %v674_v35 }
  0x2f   :  { %v126_v21 = vsub.f32 %v124_v13, %v125_v17  ;;  %v136_v22 = vsub.f32 %v134_v14, %v135_v18  ;;  %v148_v23 = vand.u32 4294901760, %v147_v19  ;;  %v682_v48 = vand.u32 4294901760, %v681_v44  ;;  %p4299_p6 = pnand %p4298_p5, %p4292_p2 }
  0x30   :  { %v155_v24 = vand.u32 4294901760, %v154_v20  ;;  %v669_v42 = vsub.f32 %v667_v34, %v668_v38  ;;  %v676_v43 = vsub.f32 %v674_v35, %v675_v39  ;;  %v689_v49 = vand.u32 4294901760, %v688_v45 }
  0x31   :  { %v127_v25 = vand.u32 4294901760, %v126_v21  ;;  %v137_v26 = vand.u32 4294901760, %v136_v22  ;;  %v683_v51 = vsub.f32 %v681_v44, %v682_v48  ;;  %v3922_v56 = vpack.c.bf16 %v580_v33, %v577_v32 }
  0x32   :  { %v3902_v27 = vpack.c.bf16 %v155_v24, %v148_v23  ;;  %v670_v46 = vand.u32 4294901760, %v669_v42  ;;  %v677_v47 = vand.u32 4294901760, %v676_v43  ;;  %v690_v52 = vsub.f32 %v688_v45, %v689_v49  ;;  %v1108_v24 = vld [vmem:[#allocation5 + $0x40] sm:$0xff] }
  0x33   :  { %3530 = vmatprep.mubr.f32.mxu0 %v127_v25  ;;  %v684_v53 = vand.u32 4294901760, %v683_v51  ;;  %v3938_v57 = vpack.c.bf16 %v674_v35, %v667_v34  ;;  %v3926_v58 = vpack.c.bf16 %v586_v41, %v583_v40  ;;  %v3942_v59 = vpack.c.bf16 %v688_v45, %v681_v44  ;;  %v1109_v25 = vld [vmem:[#allocation5 + $0x48] sm:$0xff]  ;;  %v3315_v51 = vld [vmem:[#allocation5 + $0xb1] ss:$0 sm:$0xff] }
  0x34   :  { %3531 = vmatmul.mubr.f32.vlgmr.msra.gmra.mrb[0].mxu0 %v137_v26  ;;  %3903 = vmatprep.subr.bf16.mxu0 %v3902_v27  ;;  %v3930_v50 = vpack.c.bf16 %v677_v47, %v670_v46  ;;  %v691_v54 = vand.u32 4294901760, %v690_v52  ;;  %v3954_v60 = vpack.c.bf16 %v675_v39, %v668_v38  ;;  %v3958_v61 = vpack.c.bf16 %v689_v49, %v682_v48 }
  0x35   :  { %3905 = vmatpush3.bf16.msra.mxu0 %v3902_v27  ;;  %3537 = vmatprep.mubr.f32.mxu0 %v123_v7  ;;  %v1128_v26 = vand.u32 4294901760, %v1108_v24  ;;  %v1131_v27 = vand.u32 4294901760, %v1109_v25 }
  0x36   :  { %3907 = vmatprep.subr.bf16.mxu0 %v3906_v28  ;;  %3931 = vmatprep.subr.bf16.mxu1 %v3930_v50  ;;  %v3934_v55 = vpack.c.bf16 %v691_v54, %v684_v53 }
  0x37   :  { %3933 = vmatpush3.bf16.msra.mxu1 %v3930_v50  ;;  %v4377_v30 = vpack.c.bf16 %v1131_v27, %v1128_v26  ;;  %v1226_v33 = vsub.f32 %v1108_v24, %v1128_v26  ;;  %v1233_v34 = vsub.f32 %v1109_v25, %v1131_v27 }
  0x38   :  { %3935 = vmatprep.subr.bf16.mxu1 %v3934_v55 }
  0x39   :  { %v1227_v37 = vand.u32 4294901760, %v1226_v33  ;;  %v1234_v38 = vand.u32 4294901760, %v1233_v34  ;;  %v3990_v46 = vpack.c.bf16 %v1233_v34, %v1226_v33 }
  0x3b   :  { %3937 = vmatpush3.bf16.msra.mxu1 %v3934_v55  ;;  %v1228_v40 = vsub.f32 %v1226_v33, %v1227_v37  ;;  %v1235_v41 = vsub.f32 %v1233_v34, %v1234_v38  ;;  %v4006_v48 = vpack.c.bf16 %v1234_v38, %v1227_v37 }
  0x3c   :  { %3538 = vmatmul.mubr.f32.vlgmr.msra.gmra.mrb[0].mxu0 %v133_v10  ;;  %3939 = vmatprep.subr.bf16.mxu1 %v3938_v57 }
  0x3d   :  { %3909 = vmatpush3.bf16.msra.mxu0 %v3906_v28  ;;  %3544 = vmatprep.mubr.f32.mxu0 %v124_v13  ;;  %v1229_v42 = vand.u32 4294901760, %v1228_v40  ;;  %v1236_v43 = vand.u32 4294901760, %v1235_v41  ;;  %v3316_v40 = vld [vmem:[#allocation5 + $0xb2] ss:$0 sm:$0xff] }
  0x3e   :  { %3911 = vmatprep.subr.bf16.mxu0 %v3898_v9 }
  0x3f   :  { %v3982_v44 = vpack.c.bf16 %v1236_v43, %v1229_v42 }
  0x44   :  { %3545 = vmatmul.mubr.f32.vlgmr.msra.gmra.mrb[0].mxu0 %v134_v14 }
  0x45   :  { %3913 = vmatpush3.bf16.msra.mxu0 %v3898_v9  ;;  %3551 = vmatprep.mubr.f32.mxu0 %v125_v17  ;;  %v1106_v17 = vld [vmem:[#allocation5 + $0x30] sm:$0xff] }
  0x46   :  { %3915 = vmatprep.subr.bf16.mxu0 %v3914_v29  ;;  %v1122_v19 = vand.u32 4294901760, %v1106_v17 }
  0x48   :  { %v1212_v22 = vsub.f32 %v1106_v17, %v1122_v19 }
  0x4a   :  { %v1213_v28 = vand.u32 4294901760, %v1212_v22 }
  0x4c   :  { %3552 = vmatmul.mubr.f32.vlgmr.msra.gmra.mrb[0].mxu0 %v135_v18  ;;  %v1107_v18 = vld [vmem:[#allocation5 + $0x38] sm:$0xff]  ;;  %v1214_v31 = vsub.f32 %v1212_v22, %v1213_v28 }
  0x4d   :  { %3917 = vmatpush3.bf16.msra.mxu0 %v3914_v29  ;;  %3558 = vmatprep.mubr.f32.mxu0 %v123_v7  ;;  %v1125_v20 = vand.u32 4294901760, %v1107_v18 }
  0x4e   :  { %3919 = vmatprep.subr.bf16.mxu0 %v3898_v9  ;;  %v1215_v35 = vand.u32 4294901760, %v1214_v31 }
  0x4f   :  { %v4373_v21 = vpack.c.bf16 %v1125_v20, %v1122_v19  ;;  %v1219_v23 = vsub.f32 %v1107_v18, %v1125_v20 }
  0x51   :  { %v1220_v29 = vand.u32 4294901760, %v1219_v23  ;;  %v3986_v45 = vpack.c.bf16 %v1219_v23, %v1212_v22 }
  0x53   :  { %v1221_v32 = vsub.f32 %v1219_v23, %v1220_v29  ;;  %v4002_v47 = vpack.c.bf16 %v1220_v29, %v1213_v28 }
  0x54   :  { %3559 = vmatmul.mubr.f32.vlgmr.msra.gmra.mrb[0].mxu0 %v133_v10 }
  0x55   :  { %3921 = vmatpush3.bf16.msra.mxu0 %v3898_v9  ;;  %3565 = vmatprep.mubr.f32.mxu0 %v123_v7  ;;  %v1222_v36 = vand.u32 4294901760, %v1221_v32 }
  0x56   :  { %3923 = vmatprep.subr.bf16.mxu0 %v3922_v56 }
  0x57   :  { %v3978_v39 = vpack.c.bf16 %v1222_v36, %v1215_v35 }
  0x5c   :  { %3566 = vmatmul.mubr.f32.vlgmr.msra.gmra.mrb[0].mxu0 %v133_v10 }
  0x5d   :  { %3925 = vmatpush3.bf16.msra.mxu0 %v3922_v56 }
  0x5e   :  { %3927 = vmatprep.subr.bf16.mxu0 %v3926_v58 }
  0x61   :  { %3929 = vmatpush3.bf16.msra.mxu0 %v3926_v58 }
  0x62   :  { %3971 = vmatprep.subr.bf16.mxu0 %v4373_v21 }
 0x12f   :  { %v3567_v63 = vpop.f32.mrb[0].mxu0 }
 0x130   :  { %v4162_v0 = vadd.f32 %v3567_v63, %v3314_v62  ;;  %v548_v1 = vpop.f32.mrb[1].mxu0 }
 0x131   :  { %v4163_v2 = vadd.f32 %v3314_v62, %v548_v1 }
 0x132   :  { %v559_v3 = vmax.f32 %v4162_v0, 0.0 }
 0x133   :  { %v558_v4 = vmax.f32 %v4163_v2, 0.0 }
 0x134   :  { %v574_v5 = vsel %vm569_vm1, %v559_v3, 0 }
 0x135   :  { %v655_v6 = vand.u32 4294901760, %v574_v5  ;;  %v571_v7 = vsel %vm569_vm1, %v558_v4, 0 }
 0x136   :  { %v645_v8 = vand.u32 4294901760, %v571_v7 }
 0x137   :  { %v656_v9 = vsub.f32 %v574_v5, %v655_v6 }
 0x138   :  { %3587 = vmatprep.mubr.f32.mxu1 %v645_v8  ;;  %v646_v10 = vsub.f32 %v571_v7, %v645_v8 }
 0x139   :  { %v657_v11 = vand.u32 4294901760, %v656_v9  ;;  %3588 = vmatmul.mubr.f32.vlgmr.msra.gmra.mrb[0].mxu1 %v655_v6 }
 0x13a   :  { %3941 = vmatpush3.bf16.msra.mxu1 %v3938_v57  ;;  %3598 = vmatprep.mubr.f32.mxu1 %v646_v10  ;;  %v647_v12 = vand.u32 4294901760, %v646_v10 }
 0x13b   :  { %3943 = vmatprep.subr.bf16.mxu1 %v3942_v59  ;;  %v658_v13 = vsub.f32 %v656_v9, %v657_v11 }
 0x13c   :  { %v648_v14 = vsub.f32 %v646_v10, %v647_v12  ;;  %v1663_v10 = vld [vmem:[#allocation5 + $0x60] sm:$0xff] }
 0x13d   :  { %v659_v16 = vand.u32 4294901760, %v658_v13  ;;  %v1664_v13 = vld [vmem:[#allocation5 + $0x68] sm:$0xff] }
 0x13e   :  { %3945 = vmatpush3.bf16.msra.mxu1 %v3942_v59  ;;  %v649_v15 = vand.u32 4294901760, %v648_v14  ;;  %v1683_v14 = vand.u32 4294901760, %v1663_v10 }
 0x13f   :  { %3947 = vmatprep.subr.bf16.mxu1 %v3922_v56 }
 0x140   :  { %3576 = vmatprep.mubr.f32.mxu0 %v649_v15  ;;  %v1686_v15 = vand.u32 4294901760, %v1664_v13  ;;  %v1781_v24 = vsub.f32 %v1663_v10, %v1683_v14 }
 0x141   :  { %3577 = vmatmul.mubr.f32.vlgmr.msra.gmra.mrb[2].mxu0 %v659_v16  ;;  %3599 = vmatmul.mubr.f32.vlgmr.msra.gmra.mrb[0].mxu1 %v656_v9  ;;  %v1662_v9 = vld [vmem:[#allocation5 + $0x58] sm:$0xff] }
 0x142   :  { %3949 = vmatpush3.bf16.msra.mxu1 %v3922_v56  ;;  %3609 = vmatprep.mubr.f32.mxu1 %v647_v12  ;;  %v1680_v12 = vand.u32 4294901760, %v1662_v9  ;;  %v4393_v17 = vpack.c.bf16 %v1686_v15, %v1683_v14  ;;  %v1788_v25 = vsub.f32 %v1664_v13, %v1686_v15  ;;  %v1782_v28 = vand.u32 4294901760, %v1781_v24 }
 0x143   :  { %3951 = vmatprep.subr.bf16.mxu1 %v3926_v58  ;;  %3973 = vmatpush3.bf16.msra.mxu0 %v4373_v21 }
 0x144   :  { %3975 = vmatprep.subr.bf16.mxu0 %v4377_v30  ;;  %v1774_v19 = vsub.f32 %v1662_v9, %v1680_v12  ;;  %v1789_v29 = vand.u32 4294901760, %v1788_v25  ;;  %v1783_v31 = vsub.f32 %v1781_v24, %v1782_v28  ;;  %v4038_v37 = vpack.c.bf16 %v1788_v25, %v1781_v24  ;;  %v2209_v9 = vld [vmem:[#allocation5 + $0x88] sm:$0xff] }
 0x146   :  { %3953 = vmatpush3.bf16.msra.mxu1 %v3926_v58  ;;  %v1790_v32 = vsub.f32 %v1788_v25, %v1789_v29  ;;  %v1784_v33 = vand.u32 4294901760, %v1783_v31 }
 0x147   :  { %3955 = vmatprep.subr.bf16.mxu1 %v3954_v60  ;;  %3977 = vmatpush3.bf16.msra.mxu0 %v4377_v30 }
 0x148   :  { %3979 = vmatprep.subr.bf16.mxu0 %v3978_v39  ;;  %v1791_v34 = vand.u32 4294901760, %v1790_v32 }
 0x149   :  { %3610 = vmatmul.mubr.f32.vlgmr.msra.gmra.mrb[0].mxu1 %v657_v11 }
 0x14a   :  { %3957 = vmatpush3.bf16.msra.mxu1 %v3954_v60  ;;  %3620 = vmatprep.mubr.f32.mxu1 %v645_v8  ;;  %v4030_v35 = vpack.c.bf16 %v1791_v34, %v1784_v33  ;;  %v3319_v33 = vld [vmem:[#allocation5 + $0xb3] ss:$0 sm:$0xff] }
 0x14b   :  { %3959 = vmatprep.subr.bf16.mxu1 %v3958_v61 }
 0x14e   :  { %3961 = vmatpush3.bf16.msra.mxu1 %v3958_v61 }
 0x14f   :  { %3963 = vmatprep.subr.bf16.mxu1 %v3922_v56 }
 0x151   :  { %3621 = vmatmul.mubr.f32.vlgmr.msra.gmra.mrb[0].mxu1 %v655_v6 }
 0x152   :  { %3965 = vmatpush3.bf16.msra.mxu1 %v3922_v56  ;;  %3631 = vmatprep.mubr.f32.mxu1 %v645_v8  ;;  %v1661_v8 = vld [vmem:[#allocation5 + $0x50] sm:$0xff] }
 0x153   :  { %3967 = vmatprep.subr.bf16.mxu1 %v3926_v58  ;;  %v1677_v11 = vand.u32 4294901760, %v1661_v8 }
 0x155   :  { %v4391_v16 = vpack.c.bf16 %v1680_v12, %v1677_v11  ;;  %v1767_v18 = vsub.f32 %v1661_v8, %v1677_v11  ;;  %v2208_v8 = vld [vmem:[#allocation5 + $0x80] sm:$0xff]  ;;  %v2231_v11 = vand.u32 4294901760, %v2209_v9 }
 0x156   :  { %3969 = vmatpush3.bf16.msra.mxu1 %v3926_v58  ;;  %v2228_v10 = vand.u32 4294901760, %v2208_v8 }
 0x157   :  { %4019 = vmatprep.subr.bf16.mxu1 %v4391_v16  ;;  %v1768_v20 = vand.u32 4294901760, %v1767_v18  ;;  %v4034_v36 = vpack.c.bf16 %v1774_v19, %v1767_v18 }
 0x158   :  { %v4413_v14 = vpack.c.bf16 %v2231_v11, %v2228_v10 }
 0x159   :  { %3632 = vmatmul.mubr.f32.vlgmr.msra.gmra.mrb[0].mxu1 %v655_v6  ;;  %v1769_v22 = vsub.f32 %v1767_v18, %v1768_v20  ;;  %v2333_v18 = vsub.f32 %v2209_v9, %v2231_v11 }
 0x15a   :  { %4021 = vmatpush3.bf16.msra.mxu1 %v4391_v16 }
 0x15b   :  { %4023 = vmatprep.subr.bf16.mxu1 %v4393_v17  ;;  %v1770_v26 = vand.u32 4294901760, %v1769_v22  ;;  %v2334_v22 = vand.u32 4294901760, %v2333_v18 }
 0x15d   :  { %v2335_v25 = vsub.f32 %v2333_v18, %v2334_v22 }
 0x15e   :  { %4025 = vmatpush3.bf16.msra.mxu1 %v4393_v17 }
 0x214   :  { %v3578_v49 = vpop.f32.mrb[2].mxu0 }
 0x215   :  { %v651_v50 = vpop.f32.mrb[3].mxu0  ;;  %v662_v52 = vadd.f32 %v3578_v49, %v3315_v51 }
 0x216   :  { %v652_v53 = vadd.f32 %v3315_v51, %v651_v50 }
 0x22c   :  { %v3633_v54 = vpop.f32.mrb[0].mxu1 }
 0x22d   :  { %v4165_v55 = vadd.f32 %v3633_v54, %v662_v52  ;;  %v1094_v56 = vpop.f32.mrb[1].mxu1 }
 0x22e   :  { %v4167_v57 = vadd.f32 %v1094_v56, %v652_v53 }
 0x22f   :  { %v1105_v58 = vmax.f32 %v4165_v55, 0.0 }
 0x230   :  { %v1104_v59 = vmax.f32 %v4167_v57, 0.0 }
 0x231   :  { %v1119_v60 = vsel %vm569_vm1, %v1105_v58, 0 }
 0x232   :  { %v1200_v61 = vand.u32 4294901760, %v1119_v60  ;;  %v1116_v62 = vsel %vm569_vm1, %v1104_v59, 0 }
 0x233   :  { %v1190_v63 = vand.u32 4294901760, %v1116_v62 }
 0x234   :  { %v1201_v0 = vsub.f32 %v1119_v60, %v1200_v61 }
 0x235   :  { %v1191_v1 = vsub.f32 %v1116_v62, %v1190_v63 }
 0x236   :  { %v1202_v2 = vand.u32 4294901760, %v1201_v0 }
 0x237   :  { %v1192_v3 = vand.u32 4294901760, %v1191_v1 }
 0x238   :  { %v1203_v4 = vsub.f32 %v1201_v0, %v1202_v2 }
 0x239   :  { %v1193_v5 = vsub.f32 %v1191_v1, %v1192_v3 }
 0x23a   :  { %v1204_v7 = vand.u32 4294901760, %v1203_v4 }
 0x23b   :  { %v1194_v6 = vand.u32 4294901760, %v1193_v5 }
 0x23d   :  { %3642 = vmatprep.mubr.f32.mxu0 %v1194_v6 }
 0x23e   :  { %3643 = vmatmul.mubr.f32.vlgmr.msra.gmra.mrb[4].mxu0 %v1204_v7 }
 0x23f   :  { %3981 = vmatpush3.bf16.msra.mxu0 %v3978_v39  ;;  %3653 = vmatprep.mubr.f32.mxu0 %v1190_v63  ;;  %v4054_v39 = vpack.c.bf16 %v1789_v29, %v1782_v28 }
 0x240   :  { %3983 = vmatprep.subr.bf16.mxu0 %v3982_v44 }
 0x243   :  { %3985 = vmatpush3.bf16.msra.mxu0 %v3982_v44 }
 0x244   :  { %3987 = vmatprep.subr.bf16.mxu0 %v3986_v45 }
 0x246   :  { %3654 = vmatmul.mubr.f32.vlgmr.msra.gmra.mrb[4].mxu0 %v1200_v61 }
 0x247   :  { %3989 = vmatpush3.bf16.msra.mxu0 %v3986_v45  ;;  %3664 = vmatprep.mubr.f32.mxu0 %v1191_v1  ;;  %v2206_v1 = vld [vmem:[#allocation5 + $0x70] sm:$0xff] }
 0x248   :  { %3991 = vmatprep.subr.bf16.mxu0 %v3990_v46 }
 0x24b   :  { %3993 = vmatpush3.bf16.msra.mxu0 %v3990_v46 }
 0x24c   :  { %3995 = vmatprep.subr.bf16.mxu0 %v4373_v21 }
 0x24e   :  { %3665 = vmatmul.mubr.f32.vlgmr.msra.gmra.mrb[4].mxu0 %v1201_v0 }
 0x24f   :  { %3997 = vmatpush3.bf16.msra.mxu0 %v4373_v21  ;;  %3675 = vmatprep.mubr.f32.mxu0 %v1192_v3  ;;  %v2222_v3 = vand.u32 4294901760, %v2206_v1 }
 0x250   :  { %3999 = vmatprep.subr.bf16.mxu0 %v4377_v30 }
 0x251   :  { %v2312_v6 = vsub.f32 %v2206_v1, %v2222_v3 }
 0x253   :  { %4001 = vmatpush3.bf16.msra.mxu0 %v4377_v30  ;;  %v2313_v12 = vand.u32 4294901760, %v2312_v6 }
 0x254   :  { %4003 = vmatprep.subr.bf16.mxu0 %v4002_v47 }
 0x255   :  { %v2314_v15 = vsub.f32 %v2312_v6, %v2313_v12 }
 0x256   :  { %3676 = vmatmul.mubr.f32.vlgmr.msra.gmra.mrb[4].mxu0 %v1202_v2  ;;  %v2207_v2 = vld [vmem:[#allocation5 + $0x78] sm:$0xff] }
 0x257   :  { %4005 = vmatpush3.bf16.msra.mxu0 %v4002_v47  ;;  %3686 = vmatprep.mubr.f32.mxu0 %v1190_v63  ;;  %v2225_v4 = vand.u32 4294901760, %v2207_v2 }
 0x258   :  { %4007 = vmatprep.subr.bf16.mxu0 %v4006_v48 }
 0x259   :  { %v4409_v5 = vpack.c.bf16 %v2225_v4, %v2222_v3  ;;  %v2319_v7 = vsub.f32 %v2207_v2, %v2225_v4 }
 0x25b   :  { %4009 = vmatpush3.bf16.msra.mxu0 %v4006_v48  ;;  %v2320_v13 = vand.u32 4294901760, %v2319_v7  ;;  %v4082_v29 = vpack.c.bf16 %v2319_v7, %v2312_v6 }
 0x25c   :  { %4011 = vmatprep.subr.bf16.mxu0 %v4373_v21 }
 0x25d   :  { %v4098_v31 = vpack.c.bf16 %v2320_v13, %v2313_v12 }
 0x25e   :  { %3687 = vmatmul.mubr.f32.vlgmr.msra.gmra.mrb[4].mxu0 %v1200_v61 }
 0x25f   :  { %4013 = vmatpush3.bf16.msra.mxu0 %v4373_v21  ;;  %3697 = vmatprep.mubr.f32.mxu0 %v1190_v63  ;;  %v1775_v21 = vand.u32 4294901760, %v1774_v19 }
 0x260   :  { %4015 = vmatprep.subr.bf16.mxu0 %v4377_v30 }
 0x261   :  { %v1776_v23 = vsub.f32 %v1774_v19, %v1775_v21  ;;  %v4050_v38 = vpack.c.bf16 %v1775_v21, %v1768_v20  ;;  %v2315_v19 = vand.u32 4294901760, %v2314_v15 }
 0x263   :  { %4017 = vmatpush3.bf16.msra.mxu0 %v4377_v30  ;;  %v1777_v27 = vand.u32 4294901760, %v1776_v23 }
 0x264   :  { %4067 = vmatprep.subr.bf16.mxu0 %v4409_v5 }
 0x265   :  { %v4026_v30 = vpack.c.bf16 %v1777_v27, %v1770_v26  ;;  %v2336_v27 = vand.u32 4294901760, %v2335_v25 }
 0x266   :  { %3698 = vmatmul.mubr.f32.vlgmr.msra.gmra.mrb[4].mxu0 %v1200_v61 }
 0x267   :  { %4027 = vmatprep.subr.bf16.mxu1 %v4026_v30  ;;  %4069 = vmatpush3.bf16.msra.mxu0 %v4409_v5 }
 0x268   :  { %4071 = vmatprep.subr.bf16.mxu0 %v4413_v14 }
 0x26b   :  { %4073 = vmatpush3.bf16.msra.mxu0 %v4413_v14 }
 0x339   :  { %v3699_v41 = vpop.f32.mrb[4].mxu0 }
 0x33a   :  { %v4168_v42 = vadd.f32 %v3699_v41, %v3316_v40  ;;  %v1639_v43 = vpop.f32.mrb[5].mxu0 }
 0x33b   :  { %v4169_v44 = vadd.f32 %v3316_v40, %v1639_v43 }
 0x33c   :  { %v3318_v45 = vmul.f32 -1.442695, %v4168_v42 }
 0x33d   :  { %v3317_v46 = vmul.f32 -1.442695, %v4169_v44 }
 0x33e   :  { %4239 = vpow2.f32 %v3318_v45 }
 0x33f   :  { %4241 = vpow2.f32 %v3317_v46 }
 0x348   :  { %v4240_v47 = vpop.eup %4239 }
 0x349   :  { %v4242_v48 = vpop.eup %4241  ;;  %v1656_v49 = vadd.f32 1.0, %v4240_v47 }
 0x34a   :  { %v1655_v50 = vadd.f32 1.0, %v4242_v48 }
 0x34b   :  { %4243 = vrcp.f32 %v1656_v49 }
 0x34c   :  { %4245 = vrcp.f32 %v1655_v50 }
 0x355   :  { %v4244_v51 = vpop.eup %4243 }
 0x356   :  { %v4246_v52 = vpop.eup %4245  ;;  %v1674_v53 = vsel %vm569_vm1, %v4244_v51, 0 }
 0x357   :  { %v1671_v54 = vsel %vm569_vm1, %v4246_v52, 0  ;;  %v1755_v55 = vand.u32 4294901760, %v1674_v53  ;;  %v2751_v52 = vld [vmem:[#allocation5 + $0x90] sm:$0xff] }
 0x358   :  { %v1745_v56 = vand.u32 4294901760, %v1671_v54 }
 0x359   :  { %v1756_v57 = vsub.f32 %v1674_v53, %v1755_v55  ;;  %v2752_v53 = vld [vmem:[#allocation5 + $0x98] sm:$0xff] }
 0x35a   :  { %v1746_v58 = vsub.f32 %v1671_v54, %v1745_v56  ;;  %v2767_v54 = vand.u32 4294901760, %v2751_v52 }
 0x35b   :  { %v1757_v59 = vand.u32 4294901760, %v1756_v57 }
 0x35c   :  { %v1747_v60 = vand.u32 4294901760, %v1746_v58 }
 0x35d   :  { %v1758_v61 = vsub.f32 %v1756_v57, %v1757_v59 }
 0x35e   :  { %v1748_v62 = vsub.f32 %v1746_v58, %v1747_v60 }
 0x35f   :  { %v1759_v0 = vand.u32 4294901760, %v1758_v61 }
 0x360   :  { %v1749_v63 = vand.u32 4294901760, %v1748_v62 }
 0x362   :  { %3708 = vmatprep.mubr.f32.mxu1 %v1749_v63 }
 0x363   :  { %3709 = vmatmul.mubr.f32.vlgmr.msra.gmra.mrb[2].mxu1 %v1759_v0 }
 0x364   :  { %4029 = vmatpush3.bf16.msra.mxu1 %v4026_v30  ;;  %3719 = vmatprep.mubr.f32.mxu1 %v1745_v56 }
 0x365   :  { %4031 = vmatprep.subr.bf16.mxu1 %v4030_v35 }
 0x368   :  { %4033 = vmatpush3.bf16.msra.mxu1 %v4030_v35 }
 0x369   :  { %4035 = vmatprep.subr.bf16.mxu1 %v4034_v36 }
 0x36b   :  { %3720 = vmatmul.mubr.f32.vlgmr.msra.gmra.mrb[2].mxu1 %v1755_v55 }
 0x36c   :  { %4037 = vmatpush3.bf16.msra.mxu1 %v4034_v36  ;;  %3730 = vmatprep.mubr.f32.mxu1 %v1746_v58 }
 0x36d   :  { %4039 = vmatprep.subr.bf16.mxu1 %v4038_v37 }
 0x370   :  { %4041 = vmatpush3.bf16.msra.mxu1 %v4038_v37 }
 0x371   :  { %4043 = vmatprep.subr.bf16.mxu1 %v4391_v16 }
 0x373   :  { %3731 = vmatmul.mubr.f32.vlgmr.msra.gmra.mrb[2].mxu1 %v1756_v57  ;;  %v2857_v57 = vsub.f32 %v2751_v52, %v2767_v54 }
 0x374   :  { %4045 = vmatpush3.bf16.msra.mxu1 %v4391_v16  ;;  %3741 = vmatprep.mubr.f32.mxu1 %v1747_v60  ;;  %v2754_v60 = vld [vmem:[#allocation5 + $0xa8] sm:$0xff] }
 0x375   :  { %4047 = vmatprep.subr.bf16.mxu1 %v4393_v17  ;;  %v2776_v62 = vand.u32 4294901760, %v2754_v60  ;;  %v2858_v63 = vand.u32 4294901760, %v2857_v57 }
 0x377   :  { %v2859_v2 = vsub.f32 %v2857_v57, %v2858_v63 }
 0x378   :  { %4049 = vmatpush3.bf16.msra.mxu1 %v4393_v17 }
 0x379   :  { %4051 = vmatprep.subr.bf16.mxu1 %v4050_v38  ;;  %v2860_v6 = vand.u32 4294901760, %v2859_v2 }
 0x37b   :  { %3742 = vmatmul.mubr.f32.vlgmr.msra.gmra.mrb[2].mxu1 %v1757_v59  ;;  %v2753_v59 = vld [vmem:[#allocation5 + $0xa0] sm:$0xff] }
 0x37c   :  { %4053 = vmatpush3.bf16.msra.mxu1 %v4050_v38  ;;  %3752 = vmatprep.mubr.f32.mxu1 %v1745_v56  ;;  %v2773_v61 = vand.u32 4294901760, %v2753_v59 }
 0x37d   :  { %4055 = vmatprep.subr.bf16.mxu1 %v4054_v39 }
 0x37e   :  { %v4431_v1 = vpack.c.bf16 %v2776_v62, %v2773_v61  ;;  %v2871_v4 = vsub.f32 %v2753_v59, %v2773_v61 }
 0x380   :  { %4057 = vmatpush3.bf16.msra.mxu1 %v4054_v39 }
 0x381   :  { %4059 = vmatprep.subr.bf16.mxu1 %v4391_v16 }
 0x383   :  { %3753 = vmatmul.mubr.f32.vlgmr.msra.gmra.mrb[2].mxu1 %v1755_v55 }
 0x384   :  { %4061 = vmatpush3.bf16.msra.mxu1 %v4391_v16  ;;  %3763 = vmatprep.mubr.f32.mxu1 %v1745_v56  ;;  %v2321_v16 = vsub.f32 %v2319_v7, %v2320_v13 }
 0x385   :  { %4063 = vmatprep.subr.bf16.mxu1 %v4393_v17 }
 0x386   :  { %v2322_v20 = vand.u32 4294901760, %v2321_v16 }
 0x388   :  { %4065 = vmatpush3.bf16.msra.mxu1 %v4393_v17  ;;  %v2326_v17 = vsub.f32 %v2208_v8, %v2228_v10  ;;  %v4074_v23 = vpack.c.bf16 %v2322_v20, %v2315_v19  ;;  %v2872_v8 = vand.u32 4294901760, %v2871_v4  ;;  %v3320_v20 = vld [vmem:[#allocation5 + $0xb4] ss:$0 sm:$0xff] }
 0x38a   :  { %v2327_v21 = vand.u32 4294901760, %v2326_v17  ;;  %4075 = vmatprep.subr.bf16.mxu0 %v4074_v23  ;;  %v4086_v30 = vpack.c.bf16 %v2333_v18, %v2326_v17  ;;  %v2873_v11 = vsub.f32 %v2871_v4, %v2872_v8 }
 0x38b   :  { %3764 = vmatmul.mubr.f32.vlgmr.msra.gmra.mrb[2].mxu1 %v1755_v55  ;;  %v2770_v55 = vand.u32 4294901760, %v2752_v53 }
 0x38c   :  { %v2328_v24 = vsub.f32 %v2326_v17, %v2327_v21  ;;  %v4102_v32 = vpack.c.bf16 %v2334_v22, %v2327_v21  ;;  %v2874_v13 = vand.u32 4294901760, %v2873_v11 }
 0x38d   :  { %v4427_v56 = vpack.c.bf16 %v2770_v55, %v2767_v54  ;;  %v2864_v58 = vsub.f32 %v2752_v53, %v2770_v55 }
 0x38e   :  { %v2329_v26 = vand.u32 4294901760, %v2328_v24 }
 0x38f   :  { %4115 = vmatprep.subr.bf16.mxu1 %v4427_v56  ;;  %v2865_v0 = vand.u32 4294901760, %v2864_v58  ;;  %v4130_v16 = vpack.c.bf16 %v2864_v58, %v2857_v57 }
 0x390   :  { %v4078_v28 = vpack.c.bf16 %v2336_v27, %v2329_v26  ;;  %4117 = vmatpush3.bf16.msra.mxu1 %v4427_v56 }
 0x391   :  { %v2866_v3 = vsub.f32 %v2864_v58, %v2865_v0  ;;  %4119 = vmatprep.subr.bf16.mxu1 %v4431_v1  ;;  %v4146_v18 = vpack.c.bf16 %v2865_v0, %v2858_v63 }
 0x393   :  { %v2867_v7 = vand.u32 4294901760, %v2866_v3 }
 0x394   :  { %4121 = vmatpush3.bf16.msra.mxu1 %v4431_v1 }
 0x395   :  { %v4122_v10 = vpack.c.bf16 %v2867_v7, %v2860_v6 }
 0x397   :  { %4123 = vmatprep.subr.bf16.mxu1 %v4122_v10 }
 0x45e   :  { %v3765_v34 = vpop.f32.mrb[2].mxu1 }
 0x45f   :  { %v4170_v35 = vadd.f32 %v3765_v34, %v3319_v33  ;;  %v2194_v36 = vpop.f32.mrb[3].mxu1 }
 0x460   :  { %v4171_v37 = vadd.f32 %v3319_v33, %v2194_v36 }
 0x461   :  { %v2205_v38 = vmax.f32 %v4170_v35, 0.0 }
 0x462   :  { %v2204_v39 = vmax.f32 %v4171_v37, 0.0 }
 0x463   :  { %v2219_v40 = vsel %vm569_vm1, %v2205_v38, 0 }
 0x464   :  { %v2300_v41 = vand.u32 4294901760, %v2219_v40  ;;  %v2216_v42 = vsel %vm569_vm1, %v2204_v39, 0  ;;  %v3321_v39 = vld [vmem:[#allocation5 + $0xb5] ss:$0 sm:$0xff] }
 0x465   :  { %v2290_v43 = vand.u32 4294901760, %v2216_v42 }
 0x466   :  { %v2301_v44 = vsub.f32 %v2219_v40, %v2300_v41 }
 0x467   :  { %v2291_v45 = vsub.f32 %v2216_v42, %v2290_v43 }
 0x468   :  { %v2302_v46 = vand.u32 4294901760, %v2301_v44 }
 0x469   :  { %v2292_v47 = vand.u32 4294901760, %v2291_v45 }
 0x46a   :  { %v2303_v48 = vsub.f32 %v2301_v44, %v2302_v46 }
 0x46b   :  { %v2293_v49 = vsub.f32 %v2291_v45, %v2292_v47 }
 0x46c   :  { %v2304_v51 = vand.u32 4294901760, %v2303_v48 }
 0x46d   :  { %v2294_v50 = vand.u32 4294901760, %v2293_v49 }
 0x46f   :  { %3774 = vmatprep.mubr.f32.mxu0 %v2294_v50 }
 0x470   :  { %3775 = vmatmul.mubr.f32.vlgmr.msra.gmra.mrb[6].mxu0 %v2304_v51 }
 0x471   :  { %4077 = vmatpush3.bf16.msra.mxu0 %v4074_v23  ;;  %3785 = vmatprep.mubr.f32.mxu0 %v2290_v43 }
 0x472   :  { %4079 = vmatprep.subr.bf16.mxu0 %v4078_v28 }
 0x475   :  { %4081 = vmatpush3.bf16.msra.mxu0 %v4078_v28 }
 0x476   :  { %4083 = vmatprep.subr.bf16.mxu0 %v4082_v29 }
 0x478   :  { %3786 = vmatmul.mubr.f32.vlgmr.msra.gmra.mrb[6].mxu0 %v2300_v41 }
 0x479   :  { %4085 = vmatpush3.bf16.msra.mxu0 %v4082_v29  ;;  %3796 = vmatprep.mubr.f32.mxu0 %v2291_v45 }
 0x47a   :  { %4087 = vmatprep.subr.bf16.mxu0 %v4086_v30 }
 0x47d   :  { %4089 = vmatpush3.bf16.msra.mxu0 %v4086_v30 }
 0x47e   :  { %4091 = vmatprep.subr.bf16.mxu0 %v4409_v5 }
 0x480   :  { %3797 = vmatmul.mubr.f32.vlgmr.msra.gmra.mrb[6].mxu0 %v2301_v44 }
 0x481   :  { %4093 = vmatpush3.bf16.msra.mxu0 %v4409_v5  ;;  %3807 = vmatprep.mubr.f32.mxu0 %v2292_v47 }
 0x482   :  { %4095 = vmatprep.subr.bf16.mxu0 %v4413_v14 }
 0x485   :  { %4097 = vmatpush3.bf16.msra.mxu0 %v4413_v14 }
 0x486   :  { %4099 = vmatprep.subr.bf16.mxu0 %v4098_v31 }
 0x488   :  { %3808 = vmatmul.mubr.f32.vlgmr.msra.gmra.mrb[6].mxu0 %v2302_v46 }
 0x489   :  { %4101 = vmatpush3.bf16.msra.mxu0 %v4098_v31  ;;  %3818 = vmatprep.mubr.f32.mxu0 %v2290_v43 }
 0x48a   :  { %4103 = vmatprep.subr.bf16.mxu0 %v4102_v32 }
 0x48d   :  { %4105 = vmatpush3.bf16.msra.mxu0 %v4102_v32 }
 0x48e   :  { %4107 = vmatprep.subr.bf16.mxu0 %v4409_v5 }
 0x490   :  { %3819 = vmatmul.mubr.f32.vlgmr.msra.gmra.mrb[6].mxu0 %v2300_v41 }
 0x491   :  { %4109 = vmatpush3.bf16.msra.mxu0 %v4409_v5  ;;  %3829 = vmatprep.mubr.f32.mxu0 %v2290_v43  ;;  %v2878_v5 = vsub.f32 %v2754_v60, %v2776_v62 }
 0x492   :  { %4111 = vmatprep.subr.bf16.mxu0 %v4413_v14 }
 0x493   :  { %v2879_v9 = vand.u32 4294901760, %v2878_v5  ;;  %v4134_v17 = vpack.c.bf16 %v2878_v5, %v2871_v4 }
 0x495   :  { %4113 = vmatpush3.bf16.msra.mxu0 %v4413_v14  ;;  %v2880_v12 = vsub.f32 %v2878_v5, %v2879_v9  ;;  %v4150_v19 = vpack.c.bf16 %v2879_v9, %v2872_v8 }
 0x497   :  { %v2881_v14 = vand.u32 4294901760, %v2880_v12 }
 0x498   :  { %3830 = vmatmul.mubr.f32.vlgmr.msra.gmra.mrb[6].mxu0 %v2300_v41 }
 0x499   :  { %v4126_v15 = vpack.c.bf16 %v2881_v14, %v2874_v13 }
 0x56b   :  { %v3831_v21 = vpop.f32.mrb[6].mxu0 }
 0x56c   :  { %v4172_v22 = vadd.f32 %v3831_v21, %v3320_v20  ;;  %v2739_v23 = vpop.f32.mrb[7].mxu0 }
 0x56d   :  { %v4173_v24 = vadd.f32 %v3320_v20, %v2739_v23 }
 0x56e   :  { %v2750_v25 = vmax.f32 %v4172_v22, 0.0 }
 0x56f   :  { %v2749_v26 = vmax.f32 %v4173_v24, 0.0 }
 0x570   :  { %v2764_v27 = vsel %vm569_vm1, %v2750_v25, 0 }
 0x571   :  { %v2845_v28 = vand.u32 4294901760, %v2764_v27  ;;  %v2761_v29 = vsel %vm569_vm1, %v2749_v26, 0 }
 0x572   :  { %v2835_v30 = vand.u32 4294901760, %v2761_v29 }
 0x573   :  { %v2846_v31 = vsub.f32 %v2764_v27, %v2845_v28 }
 0x574   :  { %v2836_v32 = vsub.f32 %v2761_v29, %v2835_v30 }
 0x575   :  { %v2847_v33 = vand.u32 4294901760, %v2846_v31 }
 0x576   :  { %v2837_v34 = vand.u32 4294901760, %v2836_v32 }
 0x577   :  { %v2848_v35 = vsub.f32 %v2846_v31, %v2847_v33 }
 0x578   :  { %v2838_v36 = vsub.f32 %v2836_v32, %v2837_v34 }
 0x579   :  { %v2849_v38 = vand.u32 4294901760, %v2848_v35 }
 0x57a   :  { %v2839_v37 = vand.u32 4294901760, %v2838_v36 }
 0x57c   :  { %3840 = vmatprep.mubr.f32.mxu1 %v2839_v37 }
 0x57d   :  { %3841 = vmatmul.mubr.f32.vlgmr.msra.gmra.mrb[4].mxu1 %v2849_v38 }
 0x57e   :  { %4125 = vmatpush3.bf16.msra.mxu1 %v4122_v10  ;;  %3851 = vmatprep.mubr.f32.mxu1 %v2835_v30 }
 0x57f   :  { %4127 = vmatprep.subr.bf16.mxu1 %v4126_v15 }
 0x582   :  { %4129 = vmatpush3.bf16.msra.mxu1 %v4126_v15 }
 0x583   :  { %4131 = vmatprep.subr.bf16.mxu1 %v4130_v16 }
 0x585   :  { %3852 = vmatmul.mubr.f32.vlgmr.msra.gmra.mrb[4].mxu1 %v2845_v28 }
 0x586   :  { %4133 = vmatpush3.bf16.msra.mxu1 %v4130_v16  ;;  %3862 = vmatprep.mubr.f32.mxu1 %v2836_v32 }
 0x587   :  { %4135 = vmatprep.subr.bf16.mxu1 %v4134_v17 }
 0x58a   :  { %4137 = vmatpush3.bf16.msra.mxu1 %v4134_v17 }
 0x58b   :  { %4139 = vmatprep.subr.bf16.mxu1 %v4427_v56 }
 0x58d   :  { %3863 = vmatmul.mubr.f32.vlgmr.msra.gmra.mrb[4].mxu1 %v2846_v31 }
 0x58e   :  { %4141 = vmatpush3.bf16.msra.mxu1 %v4427_v56  ;;  %3873 = vmatprep.mubr.f32.mxu1 %v2837_v34 }
 0x58f   :  { %4143 = vmatprep.subr.bf16.mxu1 %v4431_v1 }
 0x592   :  { %4145 = vmatpush3.bf16.msra.mxu1 %v4431_v1 }
 0x593   :  { %4147 = vmatprep.subr.bf16.mxu1 %v4146_v18 }
 0x595   :  { %3874 = vmatmul.mubr.f32.vlgmr.msra.gmra.mrb[4].mxu1 %v2847_v33 }
 0x596   :  { %4149 = vmatpush3.bf16.msra.mxu1 %v4146_v18  ;;  %3884 = vmatprep.mubr.f32.mxu1 %v2835_v30 }
 0x597   :  { %4151 = vmatprep.subr.bf16.mxu1 %v4150_v19 }
 0x59a   :  { %4153 = vmatpush3.bf16.msra.mxu1 %v4150_v19 }
 0x59b   :  { %4155 = vmatprep.subr.bf16.mxu1 %v4427_v56 }
 0x59d   :  { %3885 = vmatmul.mubr.f32.vlgmr.msra.gmra.mrb[4].mxu1 %v2845_v28 }
 0x59e   :  { %4157 = vmatpush3.bf16.msra.mxu1 %v4427_v56  ;;  %3895 = vmatprep.mubr.f32.mxu1 %v2835_v30 }
 0x59f   :  { %4159 = vmatprep.subr.bf16.mxu1 %v4431_v1 }
 0x5a2   :  { %4161 = vmatpush3.bf16.msra.mxu1 %v4431_v1 }
 0x5a5   :  { %3896 = vmatmul.mubr.f32.vlgmr.msra.gmra.mrb[4].mxu1 %v2845_v28 }
 0x678   :  { %v3897_v40 = vpop.f32.mrb[4].mxu1 }
 0x679   :  { %v4174_v41 = vadd.f32 %v3897_v40, %v3321_v39  ;;  %v3284_v42 = vpop.f32.mrb[5].mxu1 }
 0x67a   :  { %v4175_v43 = vadd.f32 %v3321_v39, %v3284_v42 }
 0x67b   :  { %3295 = vst.msk [vmem:[#allocation7 + $0x8] sm:$0xff] %vm49_vm0, %v4174_v41 }
 0x67c   :  { %3294 = vst.msk [vmem:[#allocation7] sm:$0xff] %vm49_vm0, %v4175_v43 }
 0x67d   :  { %4302 = shalt.err (!%p4299_p6)
}
 0x67e   :  { %s4303_s10 = scalar_lea.hbm %s4464_s2, 256 }
 0x67f   :  { %p4304_p7 = scmp.ne.s32.totalorder %s4464_s2, %s4303_s10  ;;  %p4307_p8 = scmp.lt.u32.totalorder %s4303_s10, %s4464_s2 }
 0x681   :  { %p4309_p9 = pnand %p4307_p8, %p4304_p7 }
 0x683   :  { %4312 = shalt.err (!%p4309_p9)
}
 0x684   :  { %3307 = dma.vmem_to_hbm [thread:$0]  %s3302_s6, 256, %s4464_s2, [#allocation4], %s4320_s19, %s4320_s19, %s4321_s20  }
 0x685   :  { %4317 = dma.done.wait [#allocation4], 256  }
 0x686   :  { %4318 = vsyncadd [#allocation4], 4294967040 }
 0x687   :  { %3311 = vsyncpa [#allocation3], 1 }
 0x688   :  { %3312 = vsyncpa [#allocation6], 1 }
 0x689   :  { %3313 = vsyncpa [#allocation4], 1 }

</bundles_post_ra>
